<compile_context>
chip_gen: v7x
topology: tpu7x:2x2x1
jax: 0.10.0
libtpu: 0.0.40
codegen_flags: <defaults>
</compile_context>

<pallas_src>
import jax
import jax.numpy as jnp
from jax.experimental import pallas as pl
from jax.experimental.pallas import tpu as pltpu


def _round_up(x: int, m: int) -> int:
    return ((x + m - 1) // m) * m


def _classifier_kernel(seq_ref, mask_ref, w_ref, b_ref, prob_ref, acc_ref, den_ref):
    """Grid = (batch tiles [parallel], seq tiles [arbitrary reduction])."""
    si = pl.program_id(1)

    @pl.when(si == 0)
    def _init():
        acc_ref[...] = jnp.zeros_like(acc_ref)
        den_ref[...] = jnp.zeros_like(den_ref)

    x = seq_ref[...]          # (TB, TS, Dp) float32
    m = mask_ref[...]         # (TB, TS)     float32 (cast wrapper-side)

    # Masked sum over this seq tile, accumulated in f32 VMEM scratch.
    # TODO(synk): einsum('bs,bsd->bd') would push this onto the MXU, but that
    # batched M=1 dot_general is not a clean Mosaic matmul shape; the kernel is
    # HBM-bandwidth bound, so the VPU multiply-add hides under the tile DMA.
    acc_ref[...] += jnp.sum(x * m[:, :, None], axis=1)
    den_ref[...] += jnp.sum(m, axis=1, keepdims=True)

    @pl.when(si == pl.num_programs(1) - 1)
    def _finalize():
        pooled = acc_ref[...] / jnp.maximum(den_ref[...], 1.0)   # all-zero-mask guard
        logits = jnp.dot(pooled, w_ref[...],
                         preferred_element_type=jnp.float32) + b_ref[...]
        prob_ref[...] = jax.nn.sigmoid(logits)


@jax.jit
def classifier_forward(input_seq, input_mask, weight, bias):
    """input_seq (B,S,D), input_mask (B,S), weight (D,C), bias (1,C) -> (B,C) probs."""
    B, S, D = input_seq.shape
    C = weight.shape[1]

    # Lane-dense padded layout (wrapper-side plumbing only).
    D_pad = _round_up(D, 128)          # lane-dense inner dim / MXU K
    C_pad = _round_up(C, 128)          # lane-dense output / MXU N -> unmasked stores

    # Tile sizing: keep one seq tile <= ~8 MiB so the double-buffered working set
    # stays comfortably under 32 MiB scoped VMEM on all of v5e / v6e / v7x.
    budget_per_buf = 8 * 1024 * 1024
    TB = min(128, _round_up(B, 8))                    # batch rows per tile (sublane mult of 8)
    TS = _round_up(min(max(S, 1), 512), 128)          # seq positions per tile (lane mult of 128)
    while TS > 128 and TB * TS * D_pad * 4 > budget_per_buf:
        TS -= 128
    while TB > 8 and TB * TS * D_pad * 4 > budget_per_buf:
        TB = max(8, _round_up(TB // 2, 8))

    B_pad = _round_up(B, TB)
    S_pad = _round_up(S, TS)

    f32 = jnp.float32
    seq_p = jnp.pad(input_seq.astype(f32),
                    ((0, B_pad - B), (0, S_pad - S), (0, D_pad - D)))
    mask_p = jnp.pad(input_mask.astype(f32),            # f32 mask: no in-kernel vcvt
                     ((0, B_pad - B), (0, S_pad - S)))  # zero pads -> no effect on the mean
    w_p = jnp.pad(weight.astype(f32), ((0, D_pad - D), (0, C_pad - C)))
    b_p = jnp.pad(bias.astype(f32), ((0, 0), (0, C_pad - C)))

    grid = (B_pad // TB, S_pad // TS)

    cost = pl.CostEstimate(
        flops=2 * B_pad * S_pad * D_pad + 2 * B_pad * D_pad * C_pad,
        transcendentals=B_pad * C_pad,
        bytes_accessed=4 * (B_pad * S_pad * D_pad + B_pad * S_pad
                            + D_pad * C_pad + C_pad + B_pad * C_pad),
    )

    out = pl.pallas_call(
        _classifier_kernel,
        out_shape=jax.ShapeDtypeStruct((B_pad, C_pad), f32),
        grid_spec=pltpu.PrefetchScalarGridSpec(
            num_scalar_prefetch=0,
            grid=grid,
            in_specs=[
                pl.BlockSpec((TB, TS, D_pad), lambda bi, si: (bi, si, 0)),  # input_seq
                pl.BlockSpec((TB, TS), lambda bi, si: (bi, si)),            # input_mask
                pl.BlockSpec((D_pad, C_pad), lambda bi, si: (0, 0)),        # weight
                pl.BlockSpec((1, C_pad), lambda bi, si: (0, 0)),            # bias
            ],
            out_specs=pl.BlockSpec((TB, C_pad), lambda bi, si: (bi, 0)),
            scratch_shapes=[
                pltpu.VMEM((TB, D_pad), f32),   # pooled-sum accumulator
                pltpu.VMEM((TB, 1), f32),       # mask-count accumulator
            ],
        ),
        compiler_params=pltpu.CompilerParams(
            dimension_semantics=("parallel", "arbitrary"),
            vmem_limit_bytes=32 * 1024 * 1024,
        ),
        cost_estimate=cost,
    )(seq_p, mask_p, w_p, b_p)

    return out[:B, :C]


class BaseClassifierPallas:
    """Concrete Pallas-backed BaseClassifier (masked mean pool + linear + sigmoid)."""

    def __init__(self, input_size: int, num_classes: int, key):
        assert isinstance(input_size, int) and input_size >= 1
        assert isinstance(num_classes, int) and num_classes >= 1
        self._input_size = input_size
        self._num_classes = num_classes
        kw, kb = jax.random.split(key)
        scale = 1.0 / jnp.sqrt(jnp.float32(input_size))
        self.weight = jax.random.normal(kw, (input_size, num_classes), jnp.float32) * scale
        self.bias = jax.random.normal(kb, (1, num_classes), jnp.float32) * 0.01

    @property
    def input_size(self) -> int:
        return self._input_size

    @property
    def num_classes(self) -> int:
        return self._num_classes

    def compute_logs(self, input_seq, input_mask=None):
        if input_mask is None:
            input_mask = jnp.ones(input_seq.shape[:2], jnp.float32)
        return classifier_forward(input_seq, input_mask, self.weight, self.bias)

    # TODO(synk): _compute_top (top-k labels with sigmoid threshold) is abstract in the
    # base class and host-side post-processing; not implemented as a Pallas hot path.

    def forward(self, input_seq, input_mask=None):
        return self.compute_logs(input_seq, input_mask)

    __call__ = forward


if __name__ == "__main__":
    key = jax.random.PRNGKey(0)
    k_seq, k_mask, k_params = jax.random.split(key, 3)

    B, S, D, C = 2, 8, 32, 8   # batch, seq-len, input_size, num_classes

    input_seq = jax.random.normal(k_seq, (B, S, D), jnp.float32)
    input_mask = (jax.random.uniform(k_mask, (B, S)) > 0.5).astype(jnp.int32)
    # guarantee at least one position of interest per example
    input_mask = input_mask.at[:, 0].set(1)

    model = BaseClassifierPallas(input_size=D, num_classes=C, key=k_params)

    probs = model(input_seq, input_mask)
    probs = jax.block_until_ready(probs)

    # sanity: reference in plain JAX
    m = input_mask.astype(jnp.float32)[:, :, None]
    pooled = jnp.sum(input_seq * m, axis=1) / jnp.maximum(jnp.sum(m, axis=1), 1.0)
    ref = jax.nn.sigmoid(pooled @ model.weight + model.bias)
    assert probs.shape == (B, C)
    assert jnp.allclose(probs, ref, atol=1e-4), "mismatch vs JAX reference"

    print("KERNEL_OK")
</pallas_src>

<mosaic_0001>
module attributes {stable_mosaic.version = 11 : i64} {
  func.func @_classifier_kernel(%arg0: i32, %arg1: i32, %arg2: memref<8x128x128xf32, #tpu.memory_space<vmem>>, %arg3: memref<8x128xf32, #tpu.memory_space<vmem>>, %arg4: memref<128x128xf32, #tpu.memory_space<vmem>>, %arg5: memref<1x128xf32, #tpu.memory_space<vmem>>, %arg6: memref<8x128xf32, #tpu.memory_space<vmem>>, %arg7: memref<8x128xf32, #tpu.memory_space<vmem>>, %arg8: memref<8x1xf32, #tpu.memory_space<vmem>>) attributes {dimension_semantics = [#tpu.dimension_semantics<parallel>, #tpu.dimension_semantics<arbitrary>], iteration_bounds = array<i64: 1, 1>, scalar_prefetch = 0 : i64, scratch_operands = 2 : i64, tpu.core_type = #tpu.core_type<tc>, window_params = [{transform_indices = @transform_0, window_bounds = array<i64: 8, 128, 128>}, {transform_indices = @transform_1, window_bounds = array<i64: 8, 128>}, {pipeline_mode = #tpu.pipeline_mode<synchronous>, transform_indices = @transform_2, window_bounds = array<i64: 128, 128>}, {pipeline_mode = #tpu.pipeline_mode<synchronous>, transform_indices = @transform_3, window_bounds = array<i64: 1, 128>}, {transform_indices = @transform_4, window_bounds = array<i64: 8, 128>}]} {
    %c0_i32 = arith.constant 0 : i32
    %0 = arith.cmpi eq, %arg1, %c0_i32 : i32
    %1 = arith.extui %0 : i1 to i32
    %c0_i32_0 = arith.constant 0 : i32
    %2 = arith.cmpi ne, %1, %c0_i32_0 : i32
    scf.if %2 {
      %cst_16 = arith.constant 0.000000e+00 : f32
      %20 = vector.broadcast %cst_16 : f32 to vector<8x128xf32>
      %c0_17 = arith.constant 0 : index
      %c0_18 = arith.constant 0 : index
      %21 = vector.load %arg7[%c0_17, %c0_18] : memref<8x128xf32, #tpu.memory_space<vmem>>, vector<8x128xf32>
      tpu.vector_store %arg7[%c0_17, %c0_18], %20 {strides = array<i32>} : memref<8x128xf32, #tpu.memory_space<vmem>>, vector<8x128xf32>,
      %cst_19 = arith.constant 0.000000e+00 : f32
      %22 = vector.broadcast %cst_19 : f32 to vector<8x1xf32>
      %c0_20 = arith.constant 0 : index
      %c0_21 = arith.constant 0 : index
      %23 = vector.load %arg8[%c0_20, %c0_21] : memref<8x1xf32, #tpu.memory_space<vmem>>, vector<8x1xf32>
      tpu.vector_store %arg8[%c0_20, %c0_21], %22 {strides = array<i32>} : memref<8x1xf32, #tpu.memory_space<vmem>>, vector<8x1xf32>,
    } else {
    }
    %c0 = arith.constant 0 : index
    %c0_1 = arith.constant 0 : index
    %c0_2 = arith.constant 0 : index
    %3 = vector.load %arg2[%c0, %c0_1, %c0_2] : memref<8x128x128xf32, #tpu.memory_space<vmem>>, vector<8x128x128xf32>
    %c0_3 = arith.constant 0 : index
    %c0_4 = arith.constant 0 : index
    %4 = vector.load %arg3[%c0_3, %c0_4] : memref<8x128xf32, #tpu.memory_space<vmem>>, vector<8x128xf32>
    %c0_5 = arith.constant 0 : index
    %c0_6 = arith.constant 0 : index
    %5 = vector.load %arg7[%c0_5, %c0_6] : memref<8x128xf32, #tpu.memory_space<vmem>>, vector<8x128xf32>
    %6 = vector.shape_cast %4 : vector<8x128xf32> to vector<8x128x1xf32>
    %7 = vector.broadcast %6 : vector<8x128x1xf32> to vector<8x128x128xf32>
    %8 = arith.mulf %3, %7 : vector<8x128x128xf32>
    %cst = arith.constant dense<0.000000e+00> : vector<8x128xf32>
    %9 = vector.multi_reduction <add>, %8, %cst [1] : vector<8x128x128xf32> to vector<8x128xf32>
    %10 = arith.addf %5, %9 : vector<8x128xf32>
    %c0_7 = arith.constant 0 : index
    %c0_8 = arith.constant 0 : index
    %11 = vector.load %arg7[%c0_7, %c0_8] : memref<8x128xf32, #tpu.memory_space<vmem>>, vector<8x128xf32>
    tpu.vector_store %arg7[%c0_7, %c0_8], %10 {strides = array<i32>} : memref<8x128xf32, #tpu.memory_space<vmem>>, vector<8x128xf32>,
    %c0_9 = arith.constant 0 : index
    %c0_10 = arith.constant 0 : index
    %12 = vector.load %arg8[%c0_9, %c0_10] : memref<8x1xf32, #tpu.memory_space<vmem>>, vector<8x1xf32>
    %cst_11 = arith.constant dense<0.000000e+00> : vector<8xf32>
    %13 = vector.multi_reduction <add>, %4, %cst_11 [1] : vector<8x128xf32> to vector<8xf32>
    %14 = vector.shape_cast %13 : vector<8xf32> to vector<8x1xf32>
    %15 = arith.addf %12, %14 : vector<8x1xf32>
    %c0_12 = arith.constant 0 : index
    %c0_13 = arith.constant 0 : index
    %16 = vector.load %arg8[%c0_12, %c0_13] : memref<8x1xf32, #tpu.memory_space<vmem>>, vector<8x1xf32>
    tpu.vector_store %arg8[%c0_12, %c0_13], %15 {strides = array<i32>} : memref<8x1xf32, #tpu.memory_space<vmem>>, vector<8x1xf32>,
    %c0_i32_14 = arith.constant 0 : i32
    %17 = arith.cmpi eq, %arg1, %c0_i32_14 : i32
    %18 = arith.extui %17 : i1 to i32
    %c0_i32_15 = arith.constant 0 : i32
    %19 = arith.cmpi ne, %18, %c0_i32_15 : i32
    scf.if %19 {
      %c0_16 = arith.constant 0 : index
      %c0_17 = arith.constant 0 : index
      %20 = vector.load %arg7[%c0_16, %c0_17] : memref<8x128xf32, #tpu.memory_space<vmem>>, vector<8x128xf32>
      %c0_18 = arith.constant 0 : index
      %c0_19 = arith.constant 0 : index
      %21 = vector.load %arg8[%c0_18, %c0_19] : memref<8x1xf32, #tpu.memory_space<vmem>>, vector<8x1xf32>
      %cst_20 = arith.constant 1.000000e+00 : f32
      %22 = vector.broadcast %cst_20 : f32 to vector<8x1xf32>
      %23 = arith.maximumf %21, %22 : vector<8x1xf32>
      %24 = vector.broadcast %23 : vector<8x1xf32> to vector<8x128xf32>
      %25 = arith.divf %20, %24 : vector<8x128xf32>
      %c0_21 = arith.constant 0 : index
      %c0_22 = arith.constant 0 : index
      %26 = vector.load %arg4[%c0_21, %c0_22] : memref<128x128xf32, #tpu.memory_space<vmem>>, vector<128x128xf32>
      %cst_23 = arith.constant dense<0.000000e+00> : vector<8x128xf32>
      %27 = tpu.matmul %25, %26, %cst_23 {dimension_numbers = #tpu.dot_dimension_numbers<[1], [0], [0], [1], [0, 0, 1, 1], [], []>} : vector<8x128xf32>, vector<128x128xf32>, vector<8x128xf32> -> vector<8x128xf32>
      %c0_24 = arith.constant 0 : index
      %c0_25 = arith.constant 0 : index
      %28 = vector.load %arg5[%c0_24, %c0_25] : memref<1x128xf32, #tpu.memory_space<vmem>>, vector<1x128xf32>
      %29 = vector.broadcast %28 : vector<1x128xf32> to vector<8x128xf32>
      %30 = arith.addf %27, %29 : vector<8x128xf32>
      %31 = arith.negf %30 : vector<8x128xf32>
      %32 = math.exp %31 : vector<8x128xf32>
      %cst_26 = arith.constant 1.000000e+00 : f32
      %33 = vector.broadcast %cst_26 : f32 to vector<8x128xf32>
      %34 = arith.addf %33, %32 : vector<8x128xf32>
      %35 = arith.divf %33, %34 : vector<8x128xf32>
      %c0_27 = arith.constant 0 : index
      %c0_28 = arith.constant 0 : index
      %36 = vector.load %arg6[%c0_27, %c0_28] : memref<8x128xf32, #tpu.memory_space<vmem>>, vector<8x128xf32>
      tpu.vector_store %arg6[%c0_27, %c0_28], %35 {strides = array<i32>} : memref<8x128xf32, #tpu.memory_space<vmem>>, vector<8x128xf32>,
    } else {
    }
    return
  }
  func.func @transform_0(%arg0: i32, %arg1: i32) -> (i32, i32, i32) {
    %c0_i32 = arith.constant 0 : i32
    %c0_i32_0 = arith.constant 0 : i32
    return %arg0, %arg1, %c0_i32 : i32, i32, i32
  }
  func.func @transform_1(%arg0: i32, %arg1: i32) -> (i32, i32) {
    %c0_i32 = arith.constant 0 : i32
    return %arg0, %arg1 : i32, i32
  }
  func.func @transform_2(%arg0: i32, %arg1: i32) -> (i32, i32) {
    %c0_i32 = arith.constant 0 : i32
    %c0_i32_0 = arith.constant 0 : i32
    %c0_i32_1 = arith.constant 0 : i32
    return %c0_i32, %c0_i32_0 : i32, i32
  }
  func.func @transform_3(%arg0: i32, %arg1: i32) -> (i32, i32) {
    %c0_i32 = arith.constant 0 : i32
    %c0_i32_0 = arith.constant 0 : i32
    %c0_i32_1 = arith.constant 0 : i32
    return %c0_i32, %c0_i32_0 : i32, i32
  }
  func.func @transform_4(%arg0: i32, %arg1: i32) -> (i32, i32) {
    %c0_i32 = arith.constant 0 : i32
    %c0_i32_0 = arith.constant 0 : i32
    return %arg0, %c0_i32 : i32, i32
  }
}

</mosaic_0001>

<bundles_post_ra>
// kernel: classifier_forward.1
= control target key start
LH: loop header
LB: loop body
LE: loop exit
PB: predicated region body
PF: predicated region fallthrough
CT: control target
= control target key end

     0   :  { %v154_v0 = vlaneseq  ;;  %vm22_vm0 = vcmask 7168   ;;  %v1224_v7 = vmov 0.0   ;;  %v1225_v28 = vmov 0   ;;  %s2024_s1 = inlined_call_operand.vmem [shape: f32[8,128], index: 1, kind: input, shape index: {}]   ;;  %s2025_s0 = inlined_call_operand.vmem [shape: f32[8,128,128], index: 0, kind: input, shape index: {}]   ;;  %s2026_s2 = inlined_call_operand.vmem [shape: f32[128,128], index: 2, kind: input, shape index: {}]   ;;  %s2027_s3 = inlined_call_operand.vmem [shape: f32[1,128], index: 3, kind: input, shape index: {}]   ;;  %s2028_s4 = inlined_call_operand.vmem [shape: f32[8,128], index: 4, kind: output, shape index: {}]  }
   0x1   :  { %v152_v1 = vld [vmem:[%s2024_s1] sm:$0xff]  ;;  %23 = vst.msk [vmem:[#allocation3] sm:$0xff] %vm22_vm0, %v1224_v7  ;;  %1216 = vset.pattern.permute.xlu1 %v1225_v28  ;;  %1217 = vset.pattern.permute.xlu0 %v1225_v28  ;;  %v25_v57 = vld [vmem:[%s2025_s0 + $0x8] sm:$0xff]  ;;  %vm1227_vm1 = vmmov 0   ;;  %vm994_vm2 = vcmask 1041409   ;;  %vm996_vm3 = vcmask 1042434  }
   0x2   :  { %v155_v2 = vshrl.u32 %v154_v0, 7  ;;  %1012 = vadd.xlane.f32.xlu0 %v152_v1  ;;  %v24_v54 = vld [vmem:[%s2025_s0] sm:$0xff]  ;;  %v41_v62 = vld [vmem:[%s2025_s0 + $0x88] sm:$0xff]  ;;  %1185 = vmatprep.mubr.msk.f32.mxu0 %vm1227_vm1, %v1224_v7  ;;  %vm998_vm4 = vcmask 1043459   ;;  %vm1000_vm5 = vcmask 1044484   ;;  %vm1002_vm6 = vcmask 1045509  }
   0x3   :  { %v40_v61 = vld [vmem:[%s2025_s0 + $0x80] sm:$0xff]  ;;  %v57_v0 = vld [vmem:[%s2025_s0 + $0x108] sm:$0xff]  ;;  %vm1004_vm7 = vcmask 1046534   ;;  %vm1006_vm8 = vcmask 1047559  }
   0x4   :  { %v156_v3 = vsub.s32 0, %v155_v2  ;;  %v223_v4 = vsub.s32 1, %v155_v2  ;;  %v290_v8 = vsub.s32 2, %v155_v2  ;;  %v357_v10 = vsub.s32 3, %v155_v2  ;;  %v97_v7 = vld [vmem:[%s2025_s0 + $0x248] sm:$0xff] }
   0x5   :  { %v424_v12 = vsub.s32 4, %v155_v2  ;;  %v491_v14 = vsub.s32 5, %v155_v2  ;;  %v558_v16 = vsub.s32 6, %v155_v2  ;;  %v625_v18 = vsub.s32 7, %v155_v2  ;;  %v27_v2 = vld [vmem:[%s2025_s0 + $0x18] sm:$0xff] }
   0x6   :  { %v1256_v5 = vrot.slane %v152_v1, %v156_v3  ;;  %v1258_v6 = vrot.slane %v152_v1, %v223_v4  ;;  %v1264_v9 = vrot.slane %v152_v1, %v290_v8  ;;  %v1268_v11 = vrot.slane %v152_v1, %v357_v10  ;;  %v42_v3 = vld [vmem:[%s2025_s0 + $0x90] sm:$0xff]  ;;  %v73_v8 = vld [vmem:[%s2025_s0 + $0x188] sm:$0xff]  ;;  %v72_v10 = vld [vmem:[%s2025_s0 + $0x180] sm:$0xff] }
   0x7   :  { %v1276_v13 = vrot.slane %v152_v1, %v424_v12  ;;  %v1280_v15 = vrot.slane %v152_v1, %v491_v14  ;;  %v1286_v17 = vrot.slane %v152_v1, %v558_v16  ;;  %v1294_v19 = vrot.slane %v152_v1, %v625_v18  ;;  %v26_v1 = vld [vmem:[%s2025_s0 + $0x10] sm:$0xff]  ;;  %v56_v14 = vld [vmem:[%s2025_s0 + $0x100] sm:$0xff]  ;;  %v89_v16 = vld [vmem:[%s2025_s0 + $0x208] sm:$0xff] }
   0x8   :  { %163 = vbcast.lane.b32.xlu1 %v1256_v5, 264  ;;  %v1011_v25 = vld [vmem:[#allocation3] sm:$0xff] }
   0x9   :  { %v28_v18 = vld [vmem:[%s2025_s0 + $0x20] sm:$0xff] }
   0xc   :  { %226 = vbcast.lane.b32.xlu1 %v1258_v6, 256 }
  0x10   :  { %230 = vbcast.lane.b32.xlu1 %v1258_v6, 264 }
  0x14   :  { %293 = vbcast.lane.b32.xlu1 %v1264_v9, 256 }
  0x18   :  { %297 = vbcast.lane.b32.xlu1 %v1264_v9, 264  ;;  %159 = vbcast.lane.b32.xlu0 %v1256_v5, 256 }
  0x1c   :  { %167 = vbcast.lane.b32.xlu1 %v1256_v5, 272  ;;  %360 = vbcast.lane.b32.xlu0 %v1268_v11, 256 }
  0x20   :  { %234 = vbcast.lane.b32.xlu1 %v1258_v6, 272  ;;  %301 = vbcast.lane.b32.xlu0 %v1264_v9, 272 }
  0x24   :  { %364 = vbcast.lane.b32.xlu1 %v1268_v11, 264  ;;  %431 = vbcast.lane.b32.xlu0 %v1276_v13, 264 }
  0x28   :  { %427 = vbcast.lane.b32.xlu1 %v1276_v13, 256  ;;  %238 = vbcast.lane.b32.xlu0 %v1258_v6, 280 }
  0x2c   :  { %171 = vbcast.lane.b32.xlu1 %v1256_v5, 280  ;;  %494 = vbcast.lane.b32.xlu0 %v1280_v15, 256 }
  0x30   :  { %368 = vbcast.lane.b32.xlu1 %v1268_v11, 272  ;;  %305 = vbcast.lane.b32.xlu0 %v1264_v9, 280 }
  0x34   :  { %498 = vbcast.lane.b32.xlu1 %v1280_v15, 264  ;;  %561 = vbcast.lane.b32.xlu0 %v1286_v17, 256 }
  0x38   :  { %435 = vbcast.lane.b32.xlu1 %v1276_v13, 272  ;;  %175 = vbcast.lane.b32.xlu0 %v1256_v5, 288 }
  0x3c   :  { %565 = vbcast.lane.b32.xlu1 %v1286_v17, 264  ;;  %372 = vbcast.lane.b32.xlu0 %v1268_v11, 280 }
  0x40   :  { %242 = vbcast.lane.b32.xlu1 %v1258_v6, 288  ;;  %628 = vbcast.lane.b32.xlu0 %v1294_v19, 256 }
  0x44   :  { %502 = vbcast.lane.b32.xlu1 %v1280_v15, 272  ;;  %309 = vbcast.lane.b32.xlu0 %v1264_v9, 288 }
  0x48   :  { %632 = vbcast.lane.b32.xlu1 %v1294_v19, 264  ;;  %569 = vbcast.lane.b32.xlu0 %v1286_v17, 272 }
  0x4c   :  { %439 = vbcast.lane.b32.xlu1 %v1276_v13, 280  ;;  %246 = vbcast.lane.b32.xlu0 %v1258_v6, 296 }
  0x50   :  { %179 = vbcast.lane.b32.xlu1 %v1256_v5, 296  ;;  %506 = vbcast.lane.b32.xlu0 %v1280_v15, 280 }
  0x54   :  { %376 = vbcast.lane.b32.xlu1 %v1268_v11, 288  ;;  %313 = vbcast.lane.b32.xlu0 %v1264_v9, 296 }
  0x58   :  { %636 = vbcast.lane.b32.xlu1 %v1294_v19, 272  ;;  %573 = vbcast.lane.b32.xlu0 %v1286_v17, 280 }
  0x5c   :  { %443 = vbcast.lane.b32.xlu1 %v1276_v13, 288  ;;  %250 = vbcast.lane.b32.xlu0 %v1258_v6, 304 }
  0x60   :  { %183 = vbcast.lane.b32.xlu1 %v1256_v5, 304  ;;  %510 = vbcast.lane.b32.xlu0 %v1280_v15, 288 }
  0x64   :  { %380 = vbcast.lane.b32.xlu1 %v1268_v11, 296  ;;  %317 = vbcast.lane.b32.xlu0 %v1264_v9, 304 }
  0x68   :  { %640 = vbcast.lane.b32.xlu1 %v1294_v19, 280  ;;  %577 = vbcast.lane.b32.xlu0 %v1286_v17, 288 }
  0x6c   :  { %447 = vbcast.lane.b32.xlu1 %v1276_v13, 296  ;;  %254 = vbcast.lane.b32.xlu0 %v1258_v6, 312 }
  0x70   :  { %187 = vbcast.lane.b32.xlu1 %v1256_v5, 312  ;;  %514 = vbcast.lane.b32.xlu0 %v1280_v15, 296 }
  0x74   :  { %384 = vbcast.lane.b32.xlu1 %v1268_v11, 304  ;;  %321 = vbcast.lane.b32.xlu0 %v1264_v9, 312 }
  0x78   :  { %644 = vbcast.lane.b32.xlu1 %v1294_v19, 288  ;;  %581 = vbcast.lane.b32.xlu0 %v1286_v17, 296 }
  0x7a   :  { %v1328_v20 = vpop.permute.xlu1 %163 }
  0x7b   :  { %v691_v60 = vmul.f32 %v1328_v20, %v25_v57 }
  0x7c   :  { %451 = vbcast.lane.b32.xlu1 %v1276_v13, 304  ;;  %258 = vbcast.lane.b32.xlu0 %v1258_v6, 320 }
  0x7e   :  { %v1332_v21 = vpop.permute.xlu1 %226 }
  0x80   :  { %191 = vbcast.lane.b32.xlu1 %v1256_v5, 320  ;;  %518 = vbcast.lane.b32.xlu0 %v1280_v15, 304 }
  0x82   :  { %v1336_v22 = vpop.permute.xlu1 %230 }
  0x83   :  { %v707_v12 = vmul.f32 %v1336_v22, %v41_v62 }
  0x84   :  { %388 = vbcast.lane.b32.xlu1 %v1268_v11, 312  ;;  %325 = vbcast.lane.b32.xlu0 %v1264_v9, 320 }
  0x86   :  { %v1340_v23 = vpop.permute.xlu1 %293 }
  0x88   :  { %648 = vbcast.lane.b32.xlu1 %v1294_v19, 296  ;;  %585 = vbcast.lane.b32.xlu0 %v1286_v17, 304 }
  0x8a   :  { %v1344_v24 = vpop.permute.xlu1 %297 }
  0x8c   :  { %455 = vbcast.lane.b32.xlu1 %v1276_v13, 312  ;;  %262 = vbcast.lane.b32.xlu0 %v1258_v6, 328 }
  0x8e   :  { %v1348_v26 = vpop.permute.xlu1 %167 }
  0x8f   :  { %v1013_v27 = vpop.xlane.xlu0 %1012  ;;  %v692_v22 = vmul.f32 %v1348_v26, %v26_v1  ;;  %v722_v26 = vmul.f32 %v1340_v23, %v56_v14  ;;  %v90_v14 = vld [vmem:[%s2025_s0 + $0x210] sm:$0xff] }
  0x90   :  { %v1014_v29 = vadd.f32 %v1013_v27, %v1011_v25  ;;  %195 = vbcast.lane.b32.xlu1 %v1256_v5, 328  ;;  %522 = vbcast.lane.b32.xlu0 %v1280_v15, 312  ;;  %v706_v25 = vmul.f32 %v1332_v21, %v40_v61  ;;  %v723_v27 = vmul.f32 %v1344_v24, %v57_v0  ;;  %v88_v21 = vld [vmem:[%s2025_s0 + $0x200] sm:$0xff]  ;;  %v29_v24 = vld [vmem:[%s2025_s0 + $0x28] sm:$0xff]  ;;  %v58_v61 = vld [vmem:[%s2025_s0 + $0x110] sm:$0xff] }
  0x91   :  { %v75_v0 = vld [vmem:[%s2025_s0 + $0x198] sm:$0xff] }
  0x92   :  { %1016 = vst.msk [vmem:[#allocation3] sm:$0xff] %vm22_vm0, %v1014_v29  ;;  %v1353_v30 = vpop.permute.xlu1 %234  ;;  %v74_v29 = vld [vmem:[%s2025_s0 + $0x190] sm:$0xff]  ;;  %v860_v1 = vadd.f32 %v723_v27, %v722_v26 }
  0x93   :  { %v160_v31 = vpop.permute.xlu0 %159  ;;  %v106_v26 = vld [vmem:[%s2025_s0 + $0x290] sm:$0xff] }
  0x94   :  { %392 = vbcast.lane.b32.xlu1 %v1268_v11, 320  ;;  %329 = vbcast.lane.b32.xlu0 %v1264_v9, 328  ;;  %v690_v58 = vmul.f32 %v160_v31, %v24_v54  ;;  %v708_v54 = vmul.f32 %v1353_v30, %v42_v3  ;;  %v104_v3 = vld [vmem:[%s2025_s0 + $0x280] sm:$0xff] }
  0x96   :  { %v1357_v32 = vpop.permute.xlu1 %364  ;;  %v818_v4 = vadd.f32 %v691_v60, %v690_v58  ;;  %v839_v60 = vadd.f32 %v707_v12, %v706_v25 }
  0x97   :  { %v1359_v33 = vpop.permute.xlu0 %360  ;;  %v739_v57 = vmul.f32 %v1357_v32, %v73_v8  ;;  %v43_v32 = vld [vmem:[%s2025_s0 + $0x98] sm:$0xff] }
  0x98   :  { %652 = vbcast.lane.b32.xlu1 %v1294_v19, 304  ;;  %589 = vbcast.lane.b32.xlu0 %v1286_v17, 312  ;;  %v738_v58 = vmul.f32 %v1359_v33, %v72_v10  ;;  %v840_v10 = vadd.f32 %v839_v60, %v708_v54  ;;  %v138_v60 = vld [vmem:[%s2025_s0 + $0x390] sm:$0xff] }
  0x9a   :  { %v1363_v34 = vpop.permute.xlu1 %427  ;;  %v881_v12 = vadd.f32 %v739_v57, %v738_v58 }
  0x9b   :  { %v1365_v35 = vpop.permute.xlu0 %301 }
  0x9c   :  { %459 = vbcast.lane.b32.xlu1 %v1276_v13, 320  ;;  %266 = vbcast.lane.b32.xlu0 %v1258_v6, 336 }
  0x9e   :  { %v1369_v36 = vpop.permute.xlu1 %171 }
  0x9f   :  { %v1371_v37 = vpop.permute.xlu0 %431  ;;  %v693_v28 = vmul.f32 %v1369_v36, %v27_v2  ;;  %v819_v36 = vadd.f32 %v818_v4, %v692_v22 }
  0xa0   :  { %199 = vbcast.lane.b32.xlu1 %v1256_v5, 336  ;;  %526 = vbcast.lane.b32.xlu0 %v1280_v15, 320  ;;  %v755_v30 = vmul.f32 %v1371_v37, %v89_v16  ;;  %v754_v37 = vmul.f32 %v1363_v34, %v88_v21  ;;  %v76_v16 = vld [vmem:[%s2025_s0 + $0x1a0] sm:$0xff] }
  0xa1   :  { %v820_v2 = vadd.f32 %v819_v36, %v693_v28  ;;  %v45_v28 = vld [vmem:[%s2025_s0 + $0xa8] sm:$0xff]  ;;  %v136_v21 = vld [vmem:[%s2025_s0 + $0x380] sm:$0xff] }
  0xa2   :  { %v1375_v38 = vpop.permute.xlu1 %368  ;;  %v902_v25 = vadd.f32 %v755_v30, %v754_v37 }
  0xa3   :  { %v1377_v39 = vpop.permute.xlu0 %238  ;;  %v740_v62 = vmul.f32 %v1375_v38, %v74_v29  ;;  %v44_v38 = vld [vmem:[%s2025_s0 + $0xa0] sm:$0xff] }
  0xa4   :  { %396 = vbcast.lane.b32.xlu1 %v1268_v11, 328  ;;  %333 = vbcast.lane.b32.xlu0 %v1264_v9, 336  ;;  %v709_v34 = vmul.f32 %v1377_v39, %v43_v32  ;;  %v59_v39 = vld [vmem:[%s2025_s0 + $0x118] sm:$0xff] }
  0xa5   :  { %v882_v29 = vadd.f32 %v881_v12, %v740_v62 }
  0xa6   :  { %v1381_v40 = vpop.permute.xlu1 %498  ;;  %v841_v30 = vadd.f32 %v840_v10, %v709_v34  ;;  %v60_v10 = vld [vmem:[%s2025_s0 + $0x120] sm:$0xff] }
  0xa7   :  { %v1383_v41 = vpop.permute.xlu0 %494 }
  0xa8   :  { %656 = vbcast.lane.b32.xlu1 %v1294_v19, 312  ;;  %593 = vbcast.lane.b32.xlu0 %v1286_v17, 320  ;;  %v770_v57 = vmul.f32 %v1383_v41, %v104_v3 }
  0xaa   :  { %v1387_v42 = vpop.permute.xlu1 %435 }
  0xab   :  { %v1389_v43 = vpop.permute.xlu0 %305 }
  0xac   :  { %463 = vbcast.lane.b32.xlu1 %v1276_v13, 328  ;;  %270 = vbcast.lane.b32.xlu0 %v1258_v6, 344  ;;  %v725_v32 = vmul.f32 %v1389_v43, %v59_v39  ;;  %v107_v43 = vld [vmem:[%s2025_s0 + $0x298] sm:$0xff] }
  0xae   :  { %v1393_v44 = vpop.permute.xlu1 %565 }
  0xaf   :  { %v1395_v45 = vpop.permute.xlu0 %561 }
  0xb0   :  { %203 = vbcast.lane.b32.xlu1 %v1256_v5, 344  ;;  %530 = vbcast.lane.b32.xlu0 %v1280_v15, 328 }
  0xb2   :  { %v1399_v46 = vpop.permute.xlu1 %242 }
  0xb3   :  { %v176_v47 = vpop.permute.xlu0 %175  ;;  %v710_v58 = vmul.f32 %v1399_v46, %v44_v38 }
  0xb4   :  { %400 = vbcast.lane.b32.xlu1 %v1268_v11, 336  ;;  %337 = vbcast.lane.b32.xlu0 %v1264_v9, 344  ;;  %v694_v33 = vmul.f32 %v176_v47, %v28_v18  ;;  %v105_v47 = vld [vmem:[%s2025_s0 + $0x288] sm:$0xff]  ;;  %v724_v18 = vmul.f32 %v1365_v35, %v58_v61 }
  0xb5   :  { %v771_v54 = vmul.f32 %v1381_v40, %v105_v47  ;;  %v137_v35 = vld [vmem:[%s2025_s0 + $0x388] sm:$0xff]  ;;  %v842_v47 = vadd.f32 %v841_v30, %v710_v58 }
  0xb6   :  { %v1403_v48 = vpop.permute.xlu1 %502  ;;  %v821_v27 = vadd.f32 %v820_v2, %v694_v33  ;;  %v861_v37 = vadd.f32 %v860_v1, %v724_v18  ;;  %v92_v18 = vld [vmem:[%s2025_s0 + $0x220] sm:$0xff] }
  0xb7   :  { %v1405_v49 = vpop.permute.xlu0 %372  ;;  %v923_v2 = vadd.f32 %v771_v54, %v770_v57  ;;  %v772_v3 = vmul.f32 %v1403_v48, %v106_v26  ;;  %v120_v48 = vld [vmem:[%s2025_s0 + $0x300] sm:$0xff] }
  0xb8   :  { %660 = vbcast.lane.b32.xlu1 %v1294_v19, 320  ;;  %597 = vbcast.lane.b32.xlu0 %v1286_v17, 328  ;;  %v741_v22 = vmul.f32 %v1405_v49, %v75_v0  ;;  %v46_v0 = vld [vmem:[%s2025_s0 + $0xb0] sm:$0xff]  ;;  %v862_v39 = vadd.f32 %v861_v37, %v725_v32  ;;  %v123_v32 = vld [vmem:[%s2025_s0 + $0x318] sm:$0xff] }
  0xb9   :  { %v924_v57 = vadd.f32 %v923_v2, %v772_v3  ;;  %v31_v3 = vld [vmem:[%s2025_s0 + $0x38] sm:$0xff] }
  0xba   :  { %v1409_v50 = vpop.permute.xlu1 %632 }
  0xbb   :  { %v1411_v51 = vpop.permute.xlu0 %628  ;;  %v803_v61 = vmul.f32 %v1409_v50, %v137_v35  ;;  %v91_v50 = vld [vmem:[%s2025_s0 + $0x218] sm:$0xff] }
  0xbc   :  { %467 = vbcast.lane.b32.xlu1 %v1276_v13, 336  ;;  %274 = vbcast.lane.b32.xlu0 %v1258_v6, 352  ;;  %v802_v62 = vmul.f32 %v1411_v51, %v136_v21 }
  0xbe   :  { %v1415_v52 = vpop.permute.xlu1 %439 }
  0xbf   :  { %v1417_v53 = vpop.permute.xlu0 %309 }
  0xc0   :  { %207 = vbcast.lane.b32.xlu1 %v1256_v5, 352  ;;  %534 = vbcast.lane.b32.xlu0 %v1280_v15, 336  ;;  %v726_v58 = vmul.f32 %v1417_v53, %v60_v10  ;;  %v93_v53 = vld [vmem:[%s2025_s0 + $0x228] sm:$0xff] }
  0xc2   :  { %v180_v55 = vpop.permute.xlu1 %179 }
  0xc3   :  { %v1424_v56 = vpop.permute.xlu0 %569  ;;  %v695_v4 = vmul.f32 %v180_v55, %v29_v24  ;;  %v30_v55 = vld [vmem:[%s2025_s0 + $0x30] sm:$0xff]  ;;  %v756_v24 = vmul.f32 %v1387_v42, %v90_v14  ;;  %v77_v42 = vld [vmem:[%s2025_s0 + $0x1a8] sm:$0xff] }
  0xc4   :  { %404 = vbcast.lane.b32.xlu1 %v1268_v11, 344  ;;  %341 = vbcast.lane.b32.xlu0 %v1264_v9, 352 }
  0xc5   :  { %v822_v40 = vadd.f32 %v821_v27, %v695_v4  ;;  %v903_v38 = vadd.f32 %v902_v25, %v756_v24  ;;  %v121_v4 = vld [vmem:[%s2025_s0 + $0x308] sm:$0xff]  ;;  %v965_v27 = vadd.f32 %v803_v61, %v802_v62 }
  0xc6   :  { %v1431_v59 = vpop.permute.xlu1 %376  ;;  %v787_v54 = vmul.f32 %v1393_v44, %v121_v4 }
  0xc7   :  { %v1440_v63 = vpop.permute.xlu0 %246  ;;  %v742_v41 = vmul.f32 %v1431_v59, %v76_v16  ;;  %v883_v59 = vadd.f32 %v882_v29, %v741_v22  ;;  %v757_v22 = vmul.f32 %v1415_v52, %v91_v50  ;;  %v108_v29 = vld [vmem:[%s2025_s0 + $0x2a0] sm:$0xff]  ;;  %v122_v52 = vld [vmem:[%s2025_s0 + $0x310] sm:$0xff] }
  0xc8   :  { %664 = vbcast.lane.b32.xlu1 %v1294_v19, 328  ;;  %601 = vbcast.lane.b32.xlu0 %v1286_v17, 336  ;;  %v711_v33 = vmul.f32 %v1440_v63, %v45_v28 }
  0xc9   :  { %v884_v12 = vadd.f32 %v883_v59, %v742_v41 }
  0xca   :  { %v1472_v20 = vpop.permute.xlu1 %636  ;;  %v843_v16 = vadd.f32 %v842_v47, %v711_v33  ;;  %v62_v33 = vld [vmem:[%s2025_s0 + $0x130] sm:$0xff] }
  0xcb   :  { %v1481_v31 = vpop.permute.xlu0 %506  ;;  %v804_v1 = vmul.f32 %v1472_v20, %v138_v60  ;;  %v139_v20 = vld [vmem:[%s2025_s0 + $0x398] sm:$0xff]  ;;  %v788_v60 = vmul.f32 %v1424_v56, %v122_v52  ;;  %v124_v56 = vld [vmem:[%s2025_s0 + $0x320] sm:$0xff] }
  0xcc   :  { %471 = vbcast.lane.b32.xlu1 %v1276_v13, 344  ;;  %278 = vbcast.lane.b32.xlu0 %v1258_v6, 360 }
  0xcd   :  { %v966_v24 = vadd.f32 %v965_v27, %v804_v1 }
  0xce   :  { %v1506_v23 = vpop.permute.xlu1 %443 }
  0xcf   :  { %v1518_v8 = vpop.permute.xlu0 %313  ;;  %v758_v26 = vmul.f32 %v1506_v23, %v92_v18 }
  0xd0   :  { %211 = vbcast.lane.b32.xlu1 %v1256_v5, 360  ;;  %538 = vbcast.lane.b32.xlu0 %v1280_v15, 344 }
  0xd2   :  { %v184_v49 = vpop.permute.xlu1 %183 }
  0xd3   :  { %v696_v36 = vmul.f32 %v184_v49, %v30_v55  ;;  %v1554_v46 = vpop.permute.xlu0 %573  ;;  %v773_v55 = vmul.f32 %v1481_v31, %v107_v43  ;;  %v61_v31 = vld [vmem:[%s2025_s0 + $0x128] sm:$0xff]  ;;  %v786_v49 = vmul.f32 %v1395_v45, %v120_v48  ;;  %v904_v45 = vadd.f32 %v903_v38, %v757_v22  ;;  %v47_v48 = vld [vmem:[%s2025_s0 + $0xb8] sm:$0xff] }
  0xd4   :  { %408 = vbcast.lane.b32.xlu1 %v1268_v11, 352  ;;  %345 = vbcast.lane.b32.xlu0 %v1264_v9, 360  ;;  %v727_v30 = vmul.f32 %v1518_v8, %v61_v31  ;;  %v863_v8 = vadd.f32 %v862_v39, %v726_v58  ;;  %v789_v2 = vmul.f32 %v1554_v46, %v123_v32  ;;  %v140_v39 = vld [vmem:[%s2025_s0 + $0x3a0] sm:$0xff]  ;;  %v94_v58 = vld [vmem:[%s2025_s0 + $0x230] sm:$0xff] }
  0xd5   :  { %v1571_v63 = vadd.f32 %v822_v40, %v696_v36  ;;  %v925_v36 = vadd.f32 %v924_v57, %v773_v55  ;;  %v944_v61 = vadd.f32 %v787_v54, %v786_v49  ;;  %v905_v62 = vadd.f32 %v904_v45, %v758_v26 }
  0xd6   :  { %v381_v51 = vpop.permute.xlu1 %380  ;;  %v864_v37 = vadd.f32 %v863_v8, %v727_v30 }
  0xd7   :  { %v743_v34 = vmul.f32 %v381_v51, %v77_v42  ;;  %v251_v14 = vpop.permute.xlu0 %250  ;;  %v945_v51 = vadd.f32 %v944_v61, %v788_v60  ;;  %v141_v61 = vld [vmem:[%s2025_s0 + $0x3a8] sm:$0xff] }
  0xd8   :  { %v712_v25 = vmul.f32 %v251_v14, %v46_v0  ;;  %668 = vbcast.lane.b32.xlu1 %v1294_v19, 336  ;;  %605 = vbcast.lane.b32.xlu0 %v1286_v17, 344 }
  0xd9   :  { %v885_v28 = vadd.f32 %v884_v12, %v743_v34  ;;  %v946_v46 = vadd.f32 %v945_v51, %v789_v2  ;;  %v78_v34 = vld [vmem:[%s2025_s0 + $0x1b0] sm:$0xff] }
  0xda   :  { %v844_v35 = vadd.f32 %v843_v16, %v712_v25  ;;  %v641_v21 = vpop.permute.xlu1 %640 }
  0xdb   :  { %v805_v40 = vmul.f32 %v641_v21, %v139_v20  ;;  %v511_v41 = vpop.permute.xlu0 %510 }
  0xdc   :  { %v774_v44 = vmul.f32 %v511_v41, %v108_v29  ;;  %475 = vbcast.lane.b32.xlu1 %v1276_v13, 352  ;;  %282 = vbcast.lane.b32.xlu0 %v1258_v6, 368 }
  0xdd   :  { %v967_v23 = vadd.f32 %v966_v24, %v805_v40  ;;  %v32_v40 = vld [vmem:[%s2025_s0 + $0x40] sm:$0xff] }
  0xde   :  { %v926_v42 = vadd.f32 %v925_v36, %v774_v44  ;;  %v448_v59 = vpop.permute.xlu1 %447 }
  0xdf   :  { %v759_v43 = vmul.f32 %v448_v59, %v93_v53  ;;  %v318_v0 = vpop.permute.xlu0 %317 }
  0xe0   :  { %v728_v47 = vmul.f32 %v318_v0, %v62_v33  ;;  %215 = vbcast.lane.b32.xlu1 %v1256_v5, 368  ;;  %542 = vbcast.lane.b32.xlu0 %v1280_v15, 352 }
  0xe1   :  { %v906_v50 = vadd.f32 %v905_v62, %v759_v43 }
  0xe2   :  { %v865_v38 = vadd.f32 %v864_v37, %v728_v47  ;;  %v188_v4 = vpop.permute.xlu1 %187  ;;  %v1030_v47 = vld [vmem:[%s2026_s2] sm:$0xff] }
  0xe3   :  { %v697_v10 = vmul.f32 %v188_v4, %v31_v3  ;;  %v578_v12 = vpop.permute.xlu0 %577  ;;  %v1031_v3 = vld [vmem:[%s2026_s2 + $0x8] sm:$0xff]  ;;  %v64_v4 = vld [vmem:[%s2025_s0 + $0x140] sm:$0xff] }
  0xe4   :  { %v790_v1 = vmul.f32 %v578_v12, %v124_v56  ;;  %412 = vbcast.lane.b32.xlu1 %v1268_v11, 360  ;;  %349 = vbcast.lane.b32.xlu0 %v1264_v9, 368  ;;  %v95_v56 = vld [vmem:[%s2025_s0 + $0x238] sm:$0xff]  ;;  %v1189_v51 = vpack.c.bf16 %v1031_v3, %v1030_v47 }
  0xe5   :  { %v824_v14 = vadd.f32 %v1571_v63, %v697_v10  ;;  %v109_v63 = vld [vmem:[%s2025_s0 + $0x2a8] sm:$0xff]  ;;  %v1226_v10 = vmov 0.0|0.0   ;;  %v127_v3 = vld [vmem:[%s2025_s0 + $0x338] sm:$0xff] }
  0xe6   :  { %v947_v16 = vadd.f32 %v946_v46, %v790_v1  ;;  %v385_v55 = vpop.permute.xlu1 %384  ;;  %1188 = vmatprep.subr.bf16.mxu0 %v1226_v10 }
  0xe7   :  { %v744_v18 = vmul.f32 %v385_v55, %v78_v34  ;;  %v255_v25 = vpop.permute.xlu0 %254  ;;  %1190 = vmatpush3.bf16.msra.mxu0 %v1189_v51  ;;  %v33_v55 = vld [vmem:[%s2025_s0 + $0x48] sm:$0xff] }
  0xe8   :  { %v713_v20 = vmul.f32 %v255_v25, %v47_v48  ;;  %672 = vbcast.lane.b32.xlu1 %v1294_v19, 344  ;;  %609 = vbcast.lane.b32.xlu0 %v1286_v17, 352  ;;  %v1033_v48 = vld [vmem:[%s2026_s2 + $0x18] sm:$0xff] }
  0xe9   :  { %v886_v27 = vadd.f32 %v885_v28, %v744_v18  ;;  %v63_v28 = vld [vmem:[%s2025_s0 + $0x138] sm:$0xff]  ;;  %1191 = vmatprep.subr.bf16.mxu0 %v1226_v10 }
  0xea   :  { %v845_v22 = vadd.f32 %v844_v35, %v713_v20  ;;  %v645_v31 = vpop.permute.xlu1 %644  ;;  %v126_v20 = vld [vmem:[%s2025_s0 + $0x330] sm:$0xff] }
  0xeb   :  { %v806_v29 = vmul.f32 %v645_v31, %v140_v39  ;;  %v515_v54 = vpop.permute.xlu0 %514 }
  0xec   :  { %v775_v57 = vmul.f32 %v515_v54, %v109_v63  ;;  %479 = vbcast.lane.b32.xlu1 %v1276_v13, 360  ;;  %286 = vbcast.lane.b32.xlu0 %v1258_v6, 376  ;;  %v125_v6 = vld [vmem:[%s2025_s0 + $0x328] sm:$0xff] }
  0xed   :  { %v968_v21 = vadd.f32 %v967_v23, %v806_v29  ;;  %v48_v23 = vld [vmem:[%s2025_s0 + $0xc0] sm:$0xff] }
  0xee   :  { %v927_v49 = vadd.f32 %v926_v42, %v775_v57  ;;  %v452_v52 = vpop.permute.xlu1 %451  ;;  %v80_v29 = vld [vmem:[%s2025_s0 + $0x1c0] sm:$0xff] }
  0xef   :  { %v760_v35 = vmul.f32 %v452_v52, %v94_v58  ;;  %v322_v24 = vpop.permute.xlu0 %321  ;;  %v49_v58 = vld [vmem:[%s2025_s0 + $0xc8] sm:$0xff] }
  0xf0   :  { %v729_v26 = vmul.f32 %v322_v24, %v63_v28  ;;  %219 = vbcast.lane.b32.xlu1 %v1256_v5, 376  ;;  %546 = vbcast.lane.b32.xlu0 %v1280_v15, 360  ;;  %v79_v5 = vld [vmem:[%s2025_s0 + $0x1b8] sm:$0xff] }
  0xf1   :  { %v907_v41 = vadd.f32 %v906_v50, %v760_v35  ;;  %v1036_v35 = vld [vmem:[%s2026_s2 + $0x30] sm:$0xff] }
  0xf2   :  { %v866_v36 = vadd.f32 %v865_v38, %v729_v26  ;;  %v192_v30 = vpop.permute.xlu1 %191  ;;  %v142_v26 = vld [vmem:[%s2025_s0 + $0x3b0] sm:$0xff] }
  0xf3   :  { %v698_v44 = vmul.f32 %v192_v30, %v32_v40  ;;  %v582_v53 = vpop.permute.xlu0 %581 }
  0xf4   :  { %v791_v45 = vmul.f32 %v582_v53, %v125_v6  ;;  %416 = vbcast.lane.b32.xlu1 %v1268_v11, 368  ;;  %353 = vbcast.lane.b32.xlu0 %v1264_v9, 376  ;;  %v110_v9 = vld [vmem:[%s2025_s0 + $0x2b0] sm:$0xff]  ;;  %v111_v6 = vld [vmem:[%s2025_s0 + $0x2b8] sm:$0xff] }
  0xf5   :  { %v825_v32 = vadd.f32 %v824_v14, %v698_v44  ;;  %v1032_v14 = vld [vmem:[%s2026_s2 + $0x10] sm:$0xff] }
  0xf6   :  { %v948_v33 = vadd.f32 %v947_v16, %v791_v45  ;;  %v389_v8 = vpop.permute.xlu1 %388  ;;  %v1192_v18 = vpack.c.bf16 %v1033_v48, %v1032_v14  ;;  %v1021_v45 = vld [vmem:[#allocation3] sm:$0xff]  ;;  %v50_v48 = vld [vmem:[%s2025_s0 + $0xd0] sm:$0xff] }
  0xf7   :  { %v745_v60 = vmul.f32 %v389_v8, %v79_v5  ;;  %v259_v42 = vpop.permute.xlu0 %258  ;;  %v1038_v5 = vld [vmem:[%s2026_s2 + $0x40] sm:$0xff] }
  0xf8   :  { %v714_v59 = vmul.f32 %v259_v42, %v48_v23  ;;  %676 = vbcast.lane.b32.xlu1 %v1294_v19, 352  ;;  %613 = vbcast.lane.b32.xlu0 %v1286_v17, 360  ;;  %v96_v23 = vld [vmem:[%s2025_s0 + $0x240] sm:$0xff] }
  0xf9   :  { %v887_v62 = vadd.f32 %v886_v27, %v745_v60  ;;  %1193 = vmatpush3.bf16.msra.mxu0 %v1192_v18  ;;  %v65_v60 = vld [vmem:[%s2025_s0 + $0x148] sm:$0xff]  ;;  %v1044_v18 = vld [vmem:[%s2026_s2 + $0x70] sm:$0xff] }
  0xfa   :  { %v846_v43 = vadd.f32 %v845_v22, %v714_v59  ;;  %v649_v0 = vpop.permute.xlu1 %648  ;;  %1194 = vmatprep.subr.bf16.mxu0 %v1226_v10 }
  0xfb   :  { %v807_v37 = vmul.f32 %v649_v0, %v141_v61  ;;  %v519_v2 = vpop.permute.xlu0 %518  ;;  %v1022_v61 = vmax.f32 %v1021_v45, 1.0 }
  0xfc   :  { %v776_v50 = vmul.f32 %v519_v2, %v110_v9  ;;  %483 = vbcast.lane.b32.xlu1 %v1276_v13, 368  ;;  %550 = vbcast.lane.b32.xlu0 %v1280_v15, 368 }
  0xfd   :  { %v1695_v38 = vadd.f32 %v968_v21, %v807_v37  ;;  %v34_v37 = vld [vmem:[%s2025_s0 + $0x50] sm:$0xff] }
  0xfe   :  { %v928_v12 = vadd.f32 %v927_v49, %v776_v50  ;;  %v456_v46 = vpop.permute.xlu1 %455 }
  0xff   :  { %v761_v1 = vmul.f32 %v456_v46, %v95_v56  ;;  %v326_v34 = vpop.permute.xlu0 %325 }
 0x100   :  { %v730_v16 = vmul.f32 %v326_v34, %v64_v4  ;;  %420 = vbcast.lane.b32.xlu1 %v1268_v11, 376  ;;  %487 = vbcast.lane.b32.xlu0 %v1276_v13, 376  ;;  %v1034_v11 = vld [vmem:[%s2026_s2 + $0x20] sm:$0xff]  ;;  %v1035_v13 = vld [vmem:[%s2026_s2 + $0x28] sm:$0xff] }
 0x101   :  { %v908_v25 = vadd.f32 %v907_v41, %v761_v1  ;;  %v1195_v54 = vpack.c.bf16 %v1035_v13, %v1034_v11  ;;  %v1042_v4 = vld [vmem:[%s2026_s2 + $0x60] sm:$0xff]  ;;  %v81_v1 = vld [vmem:[%s2025_s0 + $0x1c8] sm:$0xff] }
 0x102   :  { %v867_v39 = vadd.f32 %v866_v36, %v730_v16  ;;  %v196_v27 = vpop.permute.xlu1 %195  ;;  %v112_v13 = vld [vmem:[%s2025_s0 + $0x2c0] sm:$0xff] }
 0x103   :  { %v699_v63 = vmul.f32 %v196_v27, %v33_v55  ;;  %v586_v22 = vpop.permute.xlu0 %585  ;;  %1196 = vmatpush3.bf16.msra.mxu0 %v1195_v54 }
 0x104   :  { %v792_v31 = vmul.f32 %v586_v22, %v126_v20  ;;  %680 = vbcast.lane.b32.xlu1 %v1294_v19, 360  ;;  %554 = vbcast.lane.b32.xlu0 %v1280_v15, 376  ;;  %v1037_v15 = vld [vmem:[%s2026_s2 + $0x38] sm:$0xff] }
 0x105   :  { %v826_v57 = vadd.f32 %v825_v32, %v699_v63  ;;  %1197 = vmatprep.subr.bf16.mxu0 %v1226_v10  ;;  %v1198_v40 = vpack.c.bf16 %v1037_v15, %v1036_v35  ;;  %v143_v22 = vld [vmem:[%s2025_s0 + $0x3b8] sm:$0xff] }
 0x106   :  { %v949_v21 = vadd.f32 %v948_v33, %v792_v31  ;;  %v393_v28 = vpop.permute.xlu1 %392 }
 0x107   :  { %v746_v49 = vmul.f32 %v393_v28, %v80_v29  ;;  %v263_v52 = vpop.permute.xlu0 %262  ;;  %1199 = vmatpush3.bf16.msra.mxu0 %v1198_v40  ;;  %v128_v40 = vld [vmem:[%s2025_s0 + $0x340] sm:$0xff] }
 0x108   :  { %v715_v24 = vmul.f32 %v263_v52, %v49_v58  ;;  %617 = vbcast.lane.b32.xlu1 %v1286_v17, 368  ;;  %621 = vbcast.lane.b32.xlu0 %v1286_v17, 376  ;;  %v1039_v17 = vld [vmem:[%s2026_s2 + $0x48] sm:$0xff] }
 0x109   :  { %v888_v41 = vadd.f32 %v887_v62, %v746_v49  ;;  %1200 = vmatprep.subr.bf16.mxu0 %v1226_v10  ;;  %v1201_v33 = vpack.c.bf16 %v1039_v17, %v1038_v5  ;;  %v51_v5 = vld [vmem:[%s2025_s0 + $0xd8] sm:$0xff] }
 0x10a   :  { %v847_v36 = vadd.f32 %v846_v43, %v715_v24  ;;  %v653_v30 = vpop.permute.xlu1 %652  ;;  %v1040_v43 = vld [vmem:[%s2026_s2 + $0x50] sm:$0xff]  ;;  %v35_v24 = vld [vmem:[%s2025_s0 + $0x58] sm:$0xff] }
 0x10b   :  { %v808_v44 = vmul.f32 %v653_v30, %v142_v26  ;;  %v523_v53 = vpop.permute.xlu0 %522  ;;  %1202 = vmatpush3.bf16.msra.mxu0 %v1201_v33 }
 0x10c   :  { %v777_v32 = vmul.f32 %v523_v53, %v111_v6  ;;  %684 = vbcast.lane.b32.xlu1 %v1294_v19, 368  ;;  %688 = vbcast.lane.b32.xlu0 %v1294_v19, 376  ;;  %v1041_v19 = vld [vmem:[%s2026_s2 + $0x58] sm:$0xff]  ;;  %v82_v53 = vld [vmem:[%s2025_s0 + $0x1d0] sm:$0xff] }
 0x10d   :  { %v970_v8 = vadd.f32 %v1695_v38, %v808_v44  ;;  %1203 = vmatprep.subr.bf16.mxu0 %v1226_v10  ;;  %v1204_v2 = vpack.c.bf16 %v1041_v19, %v1040_v43 }
 0x10e   :  { %v929_v42 = vadd.f32 %v928_v12, %v777_v32  ;;  %v460_v59 = vpop.permute.xlu1 %459  ;;  %v1043_v12 = vld [vmem:[%s2026_s2 + $0x68] sm:$0xff] }
 0x10f   :  { %v762_v62 = vmul.f32 %v460_v59, %v96_v23  ;;  %v330_v9 = vpop.permute.xlu0 %329  ;;  %1205 = vmatpush3.bf16.msra.mxu0 %v1204_v2  ;;  %v1207_v34 = vpack.c.bf16 %v1043_v12, %v1042_v4  ;;  %v113_v59 = vld [vmem:[%s2025_s0 + $0x2c8] sm:$0xff]  ;;  %v67_v2 = vld [vmem:[%s2025_s0 + $0x158] sm:$0xff] }
 0x110   :  { %v731_v0 = vmul.f32 %v330_v9, %v65_v60  ;;  %1025 = vperm.xlu1 %1216, %v1022_v61   ;;  %1206 = vmatprep.subr.bf16.mxu0 %v1226_v10  ;;  %v144_v60 = vld [vmem:[%s2025_s0 + $0x3c0] sm:$0xff]  ;;  %v129_v12 = vld [vmem:[%s2025_s0 + $0x348] sm:$0xff] }
 0x111   :  { %v909_v47 = vadd.f32 %v908_v25, %v762_v62  ;;  %v1045_v25 = vld [vmem:[%s2026_s2 + $0x78] sm:$0xff] }
 0x112   :  { %v868_v50 = vadd.f32 %v867_v39, %v731_v0  ;;  %v200_v56 = vpop.permute.xlu1 %199  ;;  %v1210_v27 = vpack.c.bf16 %v1045_v25, %v1044_v18  ;;  %v98_v0 = vld [vmem:[%s2025_s0 + $0x250] sm:$0xff] }
 0x113   :  { %v700_v51 = vmul.f32 %v200_v56, %v34_v37  ;;  %v590_v38 = vpop.permute.xlu0 %589  ;;  %1208 = vmatpush3.bf16.msra.mxu0 %v1207_v34 }
 0x114   :  { %v793_v46 = vmul.f32 %v590_v38, %v127_v3  ;;  %1209 = vmatprep.subr.bf16.mxu0 %v1226_v10  ;;  %v36_v38 = vld [vmem:[%s2025_s0 + $0x60] sm:$0xff] }
 0x115   :  { %v827_v14 = vadd.f32 %v826_v57, %v700_v51 }
 0x116   :  { %v950_v16 = vadd.f32 %v949_v21, %v793_v46  ;;  %v397_v55 = vpop.permute.xlu1 %396  ;;  %v66_v21 = vld [vmem:[%s2025_s0 + $0x150] sm:$0xff] }
 0x117   :  { %v747_v20 = vmul.f32 %v397_v55, %v81_v1  ;;  %v267_v39 = vpop.permute.xlu0 %266  ;;  %1211 = vmatpush3.bf16.msra.mxu0 %v1210_v27  ;;  %v52_v55 = vld [vmem:[%s2025_s0 + $0xe0] sm:$0xff]  ;;  %v114_v27 = vld [vmem:[%s2025_s0 + $0x2d0] sm:$0xff] }
 0x118   :  { %v716_v63 = vmul.f32 %v267_v39, %v50_v48 }
 0x119   :  { %v889_v11 = vadd.f32 %v888_v41, %v747_v20 }
 0x11a   :  { %v848_v31 = vadd.f32 %v847_v36, %v716_v63  ;;  %v657_v29 = vpop.permute.xlu1 %656 }
 0x11b   :  { %v809_v54 = vmul.f32 %v657_v29, %v143_v22  ;;  %v527_v57 = vpop.permute.xlu0 %526 }
 0x11c   :  { %v778_v10 = vmul.f32 %v527_v57, %v112_v13 }
 0x11d   :  { %v971_v58 = vadd.f32 %v970_v8, %v809_v54 }
 0x11e   :  { %v930_v28 = vadd.f32 %v929_v42, %v778_v10  ;;  %v464_v49 = vpop.permute.xlu1 %463 }
 0x11f   :  { %v763_v52 = vmul.f32 %v464_v49, %v97_v7  ;;  %v334_v35 = vpop.permute.xlu0 %333 }
 0x120   :  { %v732_v15 = vmul.f32 %v334_v35, %v66_v21 }
 0x121   :  { %v910_v26 = vadd.f32 %v909_v47, %v763_v52 }
 0x122   :  { %v869_v41 = vadd.f32 %v868_v50, %v732_v15  ;;  %v204_v6 = vpop.permute.xlu1 %203 }
 0x123   :  { %v701_v36 = vmul.f32 %v204_v6, %v35_v24  ;;  %v594_v30 = vpop.permute.xlu0 %593 }
 0x124   :  { %v794_v44 = vmul.f32 %v594_v30, %v128_v40  ;;  %v37_v40 = vld [vmem:[%s2025_s0 + $0x68] sm:$0xff] }
 0x125   :  { %v828_v45 = vadd.f32 %v827_v14, %v701_v36  ;;  %v38_v36 = vld [vmem:[%s2025_s0 + $0x70] sm:$0xff] }
 0x126   :  { %v951_v17 = vadd.f32 %v950_v16, %v794_v44  ;;  %v401_v32 = vpop.permute.xlu1 %400 }
 0x127   :  { %v748_v23 = vmul.f32 %v401_v32, %v82_v53  ;;  %v271_v33 = vpop.permute.xlu0 %270  ;;  %v53_v53 = vld [vmem:[%s2025_s0 + $0xe8] sm:$0xff] }
 0x128   :  { %v717_v8 = vmul.f32 %v271_v33, %v51_v5 }
 0x129   :  { %v1823_v42 = vadd.f32 %v889_v11, %v748_v23  ;;  %v54_v23 = vld [vmem:[%s2025_s0 + $0xf0] sm:$0xff] }
 0x12a   :  { %v849_v61 = vadd.f32 %v848_v31, %v717_v8  ;;  %v661_v62 = vpop.permute.xlu1 %660 }
 0x12b   :  { %v810_v9 = vmul.f32 %v661_v62, %v144_v60  ;;  %v531_v43 = vpop.permute.xlu0 %530 }
 0x12c   :  { %v779_v19 = vmul.f32 %v531_v43, %v113_v59 }
 0x12d   :  { %v1831_v37 = vadd.f32 %v971_v58, %v810_v9  ;;  %v68_v9 = vld [vmem:[%s2025_s0 + $0x160] sm:$0xff] }
 0x12e   :  { %v931_v47 = vadd.f32 %v930_v28, %v779_v19  ;;  %v468_v3 = vpop.permute.xlu1 %467  ;;  %v55_v19 = vld [vmem:[%s2025_s0 + $0xf8] sm:$0xff] }
 0x12f   :  { %v764_v50 = vmul.f32 %v468_v3, %v98_v0  ;;  %v338_v56 = vpop.permute.xlu0 %337  ;;  %v83_v0 = vld [vmem:[%s2025_s0 + $0x1d8] sm:$0xff]  ;;  %v69_v3 = vld [vmem:[%s2025_s0 + $0x168] sm:$0xff] }
 0x130   :  { %v733_v51 = vmul.f32 %v338_v56, %v67_v2 }
 0x131   :  { %v1839_v4 = vadd.f32 %v910_v26, %v764_v50 }
 0x132   :  { %v1844_v46 = vadd.f32 %v869_v41, %v733_v51  ;;  %v208_v1 = vpop.permute.xlu1 %207 }
 0x133   :  { %v702_v34 = vmul.f32 %v208_v1, %v36_v38  ;;  %v598_v14 = vpop.permute.xlu0 %597  ;;  %v84_v38 = vld [vmem:[%s2025_s0 + $0x1e0] sm:$0xff] }
 0x134   :  { %v795_v48 = vmul.f32 %v598_v14, %v129_v12  ;;  %v70_v14 = vld [vmem:[%s2025_s0 + $0x170] sm:$0xff] }
 0x135   :  { %v829_v16 = vadd.f32 %v828_v45, %v702_v34 }
 0x136   :  { %v1849_v18 = vadd.f32 %v951_v17, %v795_v48  ;;  %v405_v25 = vpop.permute.xlu1 %404  ;;  %v39_v17 = vld [vmem:[%s2025_s0 + $0x78] sm:$0xff] }
 0x137   :  { %v275_v20 = vpop.permute.xlu0 %274  ;;  %v749_v34 = vmul.f32 %v405_v25, %v83_v0 }
 0x138   :  { %v718_v39 = vmul.f32 %v275_v20, %v52_v55  ;;  %v85_v55 = vld [vmem:[%s2025_s0 + $0x1e8] sm:$0xff] }
 0x13a   :  { %v850_v63 = vadd.f32 %v849_v61, %v718_v39  ;;  %v1854_v22 = vpop.permute.xlu1 %664 }
 0x13b   :  { %v535_v11 = vpop.permute.xlu0 %534 }
 0x13c   :  { %v780_v13 = vmul.f32 %v535_v11, %v114_v27 }
 0x13e   :  { %v1856_v31 = vadd.f32 %v931_v47, %v780_v13  ;;  %v1858_v29 = vpop.permute.xlu1 %471 }
 0x13f   :  { %v342_v54 = vpop.permute.xlu0 %341 }
 0x140   :  { %v734_v51 = vmul.f32 %v342_v54, %v68_v9  ;;  %v86_v54 = vld [vmem:[%s2025_s0 + $0x1f0] sm:$0xff] }
 0x142   :  { %v212_v57 = vpop.permute.xlu1 %211  ;;  %v871_v13 = vadd.f32 %v1844_v46, %v734_v51 }
 0x143   :  { %v1860_v10 = vpop.permute.xlu0 %601  ;;  %v703_v30 = vmul.f32 %v212_v57, %v37_v40 }
 0x145   :  { %v830_v32 = vadd.f32 %v829_v16, %v703_v30 }
 0x146   :  { %v409_v7 = vpop.permute.xlu1 %408 }
 0x147   :  { %v279_v58 = vpop.permute.xlu0 %278  ;;  %v750_v27 = vmul.f32 %v409_v7, %v84_v38  ;;  %v99_v7 = vld [vmem:[%s2025_s0 + $0x258] sm:$0xff] }
 0x148   :  { %v719_v33 = vmul.f32 %v279_v58, %v53_v53  ;;  %v891_v58 = vadd.f32 %v1823_v42, %v749_v34  ;;  %v87_v42 = vld [vmem:[%s2025_s0 + $0x1f8] sm:$0xff]  ;;  %v102_v34 = vld [vmem:[%s2025_s0 + $0x270] sm:$0xff] }
 0x14a   :  { %v1862_v21 = vpop.permute.xlu1 %668  ;;  %v851_v2 = vadd.f32 %v850_v63, %v719_v33  ;;  %v892_v30 = vadd.f32 %v891_v58, %v750_v27  ;;  %v146_v27 = vld [vmem:[%s2025_s0 + $0x3d0] sm:$0xff] }
 0x14b   :  { %v1864_v28 = vpop.permute.xlu0 %538 }
 0x14e   :  { %v1866_v49 = vpop.permute.xlu1 %475 }
 0x14f   :  { %v346_v52 = vpop.permute.xlu0 %345 }
 0x150   :  { %v735_v16 = vmul.f32 %v346_v52, %v69_v3 }
 0x152   :  { %v216_v35 = vpop.permute.xlu1 %215 }
 0x153   :  { %v1868_v15 = vpop.permute.xlu0 %605  ;;  %v704_v45 = vmul.f32 %v216_v35, %v38_v36  ;;  %v71_v35 = vld [vmem:[%s2025_s0 + $0x178] sm:$0xff] }
 0x155   :  { %v831_v60 = vadd.f32 %v830_v32, %v704_v45 }
 0x156   :  { %v413_v24 = vpop.permute.xlu1 %412 }
 0x157   :  { %v283_v26 = vpop.permute.xlu0 %282  ;;  %v751_v52 = vmul.f32 %v413_v24, %v85_v55  ;;  %v765_v24 = vmul.f32 %v1858_v29, %v99_v7  ;;  %v101_v29 = vld [vmem:[%s2025_s0 + $0x268] sm:$0xff] }
 0x158   :  { %v720_v62 = vmul.f32 %v283_v26, %v54_v23  ;;  %v872_v26 = vadd.f32 %v871_v13, %v735_v16  ;;  %v100_v23 = vld [vmem:[%s2025_s0 + $0x260] sm:$0xff] }
 0x159   :  { %v893_v33 = vadd.f32 %v892_v30, %v751_v52  ;;  %v766_v3 = vmul.f32 %v1866_v49, %v100_v23  ;;  %v912_v38 = vadd.f32 %v1839_v4, %v765_v24  ;;  %v131_v49 = vld [vmem:[%s2025_s0 + $0x358] sm:$0xff]  ;;  %v117_v4 = vld [vmem:[%s2025_s0 + $0x2e8] sm:$0xff] }
 0x15a   :  { %v1873_v41 = vpop.permute.xlu1 %672  ;;  %v852_v12 = vadd.f32 %v851_v2, %v720_v62  ;;  %v147_v30 = vld [vmem:[%s2025_s0 + $0x3d8] sm:$0xff] }
 0x15b   :  { %v1875_v6 = vpop.permute.xlu0 %542 }
 0x15e   :  { %v1880_v44 = vpop.permute.xlu1 %479 }
 0x15f   :  { %v350_v5 = vpop.permute.xlu0 %349 }
 0x160   :  { %v736_v25 = vmul.f32 %v350_v5, %v70_v14 }
 0x162   :  { %v220_v8 = vpop.permute.xlu1 %219  ;;  %v873_v5 = vadd.f32 %v872_v26, %v736_v25 }
 0x163   :  { %v705_v59 = vmul.f32 %v220_v8, %v39_v17  ;;  %v1891_v61 = vpop.permute.xlu0 %609  ;;  %v130_v8 = vld [vmem:[%s2025_s0 + $0x350] sm:$0xff] }
 0x165   :  { %v832_v43 = vadd.f32 %v831_v60, %v705_v59  ;;  %v115_v60 = vld [vmem:[%s2025_s0 + $0x2d8] sm:$0xff] }
 0x166   :  { %v417_v47 = vpop.permute.xlu1 %416 }
 0x167   :  { %v833_v50 = vrot.slane %v832_v43, 4  ;;  %v287_v56 = vpop.permute.xlu0 %286  ;;  %v752_v53 = vmul.f32 %v417_v47, %v86_v54  ;;  %v145_v47 = vld [vmem:[%s2025_s0 + $0x3c8] sm:$0xff]  ;;  %v132_v54 = vld [vmem:[%s2025_s0 + $0x360] sm:$0xff] }
 0x168   :  { %v721_v1 = vmul.f32 %v287_v56, %v55_v19 }
 0x169   :  { %v834_v48 = vadd.f32 %v833_v50, %v832_v43  ;;  %v894_v19 = vadd.f32 %v893_v33, %v752_v53  ;;  %v116_v50 = vld [vmem:[%s2025_s0 + $0x2e0] sm:$0xff] }
 0x16a   :  { %v853_v20 = vadd.f32 %v852_v12, %v721_v1  ;;  %v1914_v39 = vpop.permute.xlu1 %676  ;;  %v796_v12 = vmul.f32 %v1860_v10, %v130_v8  ;;  %v781_v1 = vmul.f32 %v1864_v28, %v115_v60  ;;  %v811_v28 = vmul.f32 %v1854_v22, %v145_v47  ;;  %v118_v22 = vld [vmem:[%s2025_s0 + $0x2f0] sm:$0xff] }
 0x16b   :  { %v835_v63 = vrot.slane %v834_v48, 2  ;;  %v1916_v11 = vpop.permute.xlu0 %546  ;;  %v813_v60 = vmul.f32 %v1873_v41, %v147_v30 }
 0x16c   :  { %v854_v57 = vrot.slane %v853_v20, 4  ;;  %v783_v7 = vmul.f32 %v1916_v11, %v117_v4 }
 0x16d   :  { %v836_v40 = vadd.f32 %v835_v63, %v834_v48  ;;  %v767_v48 = vmul.f32 %v1880_v44, %v101_v29  ;;  %v782_v63 = vmul.f32 %v1875_v6, %v116_v50  ;;  %v913_v44 = vadd.f32 %v912_v38, %v766_v3 }
 0x16e   :  { %v855_v46 = vadd.f32 %v854_v57, %v853_v20  ;;  %v484_v36 = vpop.permute.xlu1 %483  ;;  %v797_v6 = vmul.f32 %v1868_v15, %v131_v49  ;;  %v798_v15 = vmul.f32 %v1891_v61, %v132_v54 }
 0x16f   :  { %v354_v45 = vpop.permute.xlu0 %353  ;;  %v837_v59 = vrot.slane %v836_v40, 1  ;;  %v768_v58 = vmul.f32 %v484_v36, %v102_v34  ;;  %v812_v36 = vmul.f32 %v1862_v21, %v146_v27  ;;  %v914_v53 = vadd.f32 %v913_v44, %v767_v48  ;;  %v148_v21 = vld [vmem:[%s2025_s0 + $0x3e0] sm:$0xff] }
 0x170   :  { %v856_v17 = vrot.slane %v855_v46, 2  ;;  %v737_v32 = vmul.f32 %v354_v45, %v71_v35  ;;  %v933_v35 = vadd.f32 %v1856_v31, %v781_v1  ;;  %v814_v41 = vmul.f32 %v1914_v39, %v148_v21  ;;  %v135_v39 = vld [vmem:[%s2025_s0 + $0x378] sm:$0xff] }
 0x171   :  { %v838_v16 = vadd.f32 %v837_v59, %v836_v40  ;;  %v103_v40 = vld [vmem:[%s2025_s0 + $0x278] sm:$0xff]  ;;  %v915_v24 = vadd.f32 %v914_v53, %v768_v58 }
 0x172   :  { %v857_v62 = vadd.f32 %v856_v17, %v855_v46  ;;  %v874_v9 = vadd.f32 %v873_v5, %v737_v32  ;;  %v421_v43 = vpop.permute.xlu1 %420  ;;  %v953_v46 = vadd.f32 %v1849_v18, %v796_v12  ;;  %v934_v5 = vadd.f32 %v933_v35, %v782_v63  ;;  %v133_v17 = vld [vmem:[%s2025_s0 + $0x368] sm:$0xff] }
 0x173   :  { %v753_v0 = vmul.f32 %v421_v43, %v87_v42  ;;  %v614_v2 = vpop.permute.xlu0 %613  ;;  %v973_v18 = vadd.f32 %v1831_v37, %v811_v28  ;;  %v119_v37 = vld [vmem:[%s2025_s0 + $0x2f8] sm:$0xff] }
 0x174   :  { %v858_v56 = vrot.slane %v857_v62, 1  ;;  %v875_v51 = vrot.slane %v874_v9, 4  ;;  %v954_v8 = vadd.f32 %v953_v46, %v797_v6  ;;  %v935_v61 = vadd.f32 %v934_v5, %v783_v7 }
 0x175   :  { %v895_v14 = vadd.f32 %v894_v19, %v753_v0  ;;  %v799_v29 = vmul.f32 %v614_v2, %v133_v17  ;;  %v149_v19 = vld [vmem:[%s2025_s0 + $0x3e8] sm:$0xff]  ;;  %v150_v2 = vld [vmem:[%s2025_s0 + $0x3f0] sm:$0xff] }
 0x176   :  { %v859_v55 = vadd.f32 %v858_v56, %v857_v62  ;;  %v876_v10 = vadd.f32 %v875_v51, %v874_v9  ;;  %v681_v20 = vpop.permute.xlu1 %680  ;;  %v134_v62 = vld [vmem:[%s2025_s0 + $0x370] sm:$0xff]  ;;  %v974_v9 = vadd.f32 %v973_v18, %v812_v36  ;;  %v955_v47 = vadd.f32 %v954_v8, %v798_v15 }
 0x177   :  { %v896_v13 = vrot.slane %v895_v14, 4  ;;  %v551_v25 = vpop.permute.xlu0 %550  ;;  %v815_v48 = vmul.f32 %v681_v20, %v149_v19  ;;  %v151_v20 = vld [vmem:[%s2025_s0 + $0x3f8] sm:$0xff] }
 0x178   :  { %v995_v57 = vsel %vm994_vm2, %v859_v55, %v838_v16  ;;  %v877_v52 = vrot.slane %v876_v10, 2  ;;  %v784_v32 = vmul.f32 %v551_v25, %v118_v22  ;;  %v956_v16 = vadd.f32 %v955_v47, %v799_v29 }
 0x179   :  { %v897_v26 = vadd.f32 %v896_v13, %v895_v14  ;;  %v975_v14 = vadd.f32 %v974_v9, %v813_v60 }
 0x17a   :  { %v878_v45 = vadd.f32 %v877_v52, %v876_v10  ;;  %v618_v31 = vpop.permute.xlu1 %617  ;;  %v936_v50 = vadd.f32 %v935_v61, %v784_v32 }
 0x17b   :  { %v898_v11 = vrot.slane %v897_v26, 2  ;;  %v488_v42 = vpop.permute.xlu0 %487  ;;  %v800_v38 = vmul.f32 %v618_v31, %v134_v62  ;;  %v976_v10 = vadd.f32 %v975_v14, %v814_v41 }
 0x17c   :  { %v879_v23 = vrot.slane %v878_v45, 1  ;;  %v769_v33 = vmul.f32 %v488_v42, %v103_v40 }
 0x17d   :  { %v899_v59 = vadd.f32 %v898_v11, %v897_v26  ;;  %v957_v13 = vadd.f32 %v956_v16, %v800_v38 }
 0x17e   :  { %v880_v43 = vadd.f32 %v879_v23, %v878_v45  ;;  %v916_v0 = vadd.f32 %v915_v24, %v769_v33  ;;  %v685_v1 = vpop.permute.xlu1 %684 }
 0x17f   :  { %v900_v3 = vrot.slane %v899_v59, 1  ;;  %v555_v56 = vpop.permute.xlu0 %554  ;;  %v816_v27 = vmul.f32 %v685_v1, %v150_v2 }
 0x180   :  { %v997_v51 = vsel %vm996_vm3, %v880_v43, %v995_v57  ;;  %v917_v12 = vrot.slane %v916_v0, 4  ;;  %v785_v34 = vmul.f32 %v555_v56, %v119_v37  ;;  %v977_v57 = vadd.f32 %v976_v10, %v815_v48  ;;  %v1134_v43 = vld [vmem:[%s2027_s3] ss:$0 sm:$0xff] }
 0x181   :  { %v901_v49 = vadd.f32 %v900_v3, %v899_v59 }
 0x182   :  { %v918_v55 = vadd.f32 %v917_v12, %v916_v0  ;;  %v937_v4 = vadd.f32 %v936_v50, %v785_v34  ;;  %v978_v35 = vadd.f32 %v977_v57, %v816_v27 }
 0x183   :  { %v999_v28 = vsel %vm998_vm4, %v901_v49, %v997_v51  ;;  %v622_v63 = vpop.permute.xlu0 %621 }
 0x184   :  { %v919_v25 = vrot.slane %v918_v55, 2  ;;  %v938_v44 = vrot.slane %v937_v4, 4  ;;  %v801_v54 = vmul.f32 %v622_v63, %v135_v39 }
 0x186   :  { %v920_v58 = vadd.f32 %v919_v25, %v918_v55  ;;  %v939_v52 = vadd.f32 %v938_v44, %v937_v4  ;;  %v958_v22 = vadd.f32 %v957_v13, %v801_v54 }
 0x187   :  { %v689_v6 = vpop.permute.xlu0 %688 }
 0x188   :  { %v921_v7 = vrot.slane %v920_v58, 1  ;;  %v940_v26 = vrot.slane %v939_v52, 2  ;;  %v959_v40 = vrot.slane %v958_v22, 4  ;;  %v817_v46 = vmul.f32 %v689_v6, %v151_v20 }
 0x18a   :  { %v922_v36 = vadd.f32 %v921_v7, %v920_v58  ;;  %v941_v30 = vadd.f32 %v940_v26, %v939_v52  ;;  %v960_v53 = vadd.f32 %v959_v40, %v958_v22  ;;  %v979_v45 = vadd.f32 %v978_v35, %v817_v46 }
 0x18c   :  { %v942_v31 = vrot.slane %v941_v30, 1  ;;  %v961_v5 = vrot.slane %v960_v53, 2  ;;  %v980_v15 = vrot.slane %v979_v45, 4  ;;  %v1001_v11 = vsel %vm1000_vm5, %v922_v36, %v999_v28 }
 0x18e   :  { %v943_v17 = vadd.f32 %v942_v31, %v941_v30  ;;  %v962_v32 = vadd.f32 %v961_v5, %v960_v53  ;;  %v981_v42 = vadd.f32 %v980_v15, %v979_v45 }
 0x18f   :  { %v1026_v18 = vpop.permute.xlu1 %1025 }
 0x190   :  { %v963_v21 = vrot.slane %v962_v32, 1  ;;  %v982_v24 = vrot.slane %v981_v42, 2  ;;  %1218 = vrcp.f32 %v1026_v18  ;;  %v1003_v23 = vsel %vm1002_vm6, %v943_v17, %v1001_v11 }
 0x192   :  { %v964_v33 = vadd.f32 %v963_v21, %v962_v32  ;;  %v983_v8 = vadd.f32 %v982_v24, %v981_v42 }
 0x194   :  { %v984_v60 = vrot.slane %v983_v8, 1  ;;  %v1005_v61 = vsel %vm1004_vm7, %v964_v33, %v1003_v23 }
 0x196   :  { %v985_v59 = vadd.f32 %v984_v60, %v983_v8 }
 0x198   :  { %v1007_v62 = vsel %vm1006_vm8, %v985_v59, %v1005_v61 }
 0x19a   :  { %v1219_v37 = vpop.eup %1218 }
 0x19b   :  { %v1029_v9 = vmul.f32 %v1219_v37, %v1007_v62 }
 0x19d   :  { %1186 = vmatmul.mubr.f32.vlgmr.msra.gmra.mrb[0].mxu0 %v1029_v9 }
 0x270   :  { %v1119_v29 = vpop.f32.mrb[0].mxu0 }
 0x271   :  { %v1120_v19 = vadd.f32 %v1134_v43, %v1119_v29  ;;  %v1187_v0 = vpop.f32.mrb[1].mxu0 }
 0x273   :  { %v1135_v47 = vmul.f32 -1.442695, %v1120_v19 }
 0x275   :  { %1220 = vpow2.f32 %v1135_v47 }
 0x27f   :  { %v1221_v41 = vpop.eup %1220 }
 0x280   :  { %v1126_v3 = vadd.f32 1.0, %v1221_v41 }
 0x282   :  { %1222 = vrcp.f32 %v1126_v3 }
 0x28c   :  { %v1223_v50 = vpop.eup %1222 }
 0x28d   :  { %1129 = vst [vmem:[%s2028_s4] sm:$0xff] %v1223_v50 }

</bundles_post_ra>
